<compile_context>
chip_gen: v5e
topology: v5e:2x2
jax: 0.10.0
libtpu: 0.0.40
codegen_flags: <defaults>
</compile_context>

<pallas_src>
import functools

import jax
import jax.numpy as jnp
from jax.experimental import pallas as pl
from jax.experimental.pallas import tpu as pltpu


def dot_prod_attn_kernel(q_ref, k_ref, v_ref, o_ref, *, scale):
    # q_ref: (bt, d)   k_ref: (bt, L, d)   v_ref: (bt, L, dv)   o_ref: (bt, dv)
    q = q_ref[...].astype(jnp.float32) * scale               # fold 1/sqrt(d) into q
    k = k_ref[...].astype(jnp.float32)                       # (bt, L, d)
    v = v_ref[...].astype(jnp.float32)                       # (bt, L, dv)

    # scores[b, l] = k[b, l, :] . (q[b, :] / sqrt(d_model))
    # Lane-major (bt, L): VPU broadcast-multiply + reduce over d instead of a
    # batched N=1 MXU matmul (which would waste nearly all MXU columns).
    scores = jnp.sum(k * q[:, None, :], axis=-1)             # (bt, L)

    # TODO(synk): attn_mask path not implemented (attn_mask=None assumed).

    # Numerically-stable softmax over the key-length axis, all in f32.
    m = jnp.max(scores, axis=-1, keepdims=True)              # (bt, 1)
    e = jnp.exp(scores - m)                                   # (bt, L)
    denom = jnp.sum(e, axis=-1, keepdims=True)                # (bt, 1)
    w = e / denom                                             # exact, not approx

    # TODO(synk): dropout on attention weights omitted (eval-mode identity).

    # ctx[b, :] = sum_l w[b, l] * v[b, l, :]
    # VPU weighted accumulate keeps dv lane-dense, keeps w in f32, and avoids
    # an M=1 MXU matmul per batch row.
    ctx = jnp.sum(w[:, :, None] * v, axis=1)                  # (bt, dv)
    o_ref[...] = ctx.astype(o_ref.dtype)


def _pick_batch_tile(B, L, d, dv, in_bytes, out_bytes, block_b, vmem_budget_bytes):
    """Largest batch tile that fits the double-buffered VMEM budget."""
    # Per batch row, double-buffered: q + k + v tiles in, ctx tile out.
    per_row = 2 * ((L * (d + dv) + d) * in_bytes + dv * out_bytes)
    cap = max(int(vmem_budget_bytes // per_row), 1)
    bt = min(block_b, B, cap)
    if bt >= B:
        return B                       # single (or full-batch) block, no constraint
    # Multi-block: keep the sublane dim of the 2-D q/out blocks a multiple of 8.
    bt = (bt // 8) * 8
    return max(bt, min(8, B))


@functools.partial(jax.jit, static_argnames=("block_b",))
def dot_prod_attn(q, k, v, block_b=256):
    B, d = q.shape
    Bk, L, dk = k.shape
    Bv, Lv, dv = v.shape
    assert dk == d and Lv == L and Bk == B and Bv == B

    # temp = sqrt(d_model); d_model == d_q per the module contract.
    scale = 1.0 / (float(d) ** 0.5)

    # Explicit scoped-VMEM limit (above v5e's 16 MiB default, within v7x's
    # 64 MiB physical); tile budget leaves headroom under it.
    vmem_limit = 32 * 1024 * 1024
    tile_budget = 24 * 1024 * 1024
    bt = _pick_batch_tile(B, L, d, dv, q.dtype.itemsize, q.dtype.itemsize,
                          block_b, tile_budget)
    n_blocks = pl.cdiv(B, bt)
    # Ragged tail (B % bt != 0) is handled by Pallas partial-block semantics:
    # rows are independent, so garbage in the padded rows never leaks, and
    # out-of-bounds output rows are dropped.  No jnp.pad copies of k/v.

    return pl.pallas_call(
        functools.partial(dot_prod_attn_kernel, scale=scale),
        out_shape=jax.ShapeDtypeStruct((B, dv), q.dtype),
        grid_spec=pltpu.PrefetchScalarGridSpec(
            num_scalar_prefetch=0,
            grid=(n_blocks,),
            in_specs=[
                pl.BlockSpec((bt, d), lambda b: (b, 0)),
                pl.BlockSpec((bt, L, d), lambda b: (b, 0, 0)),
                pl.BlockSpec((bt, L, dv), lambda b: (b, 0, 0)),
            ],
            out_specs=pl.BlockSpec((bt, dv), lambda b: (b, 0)),
        ),
        compiler_params=pltpu.CompilerParams(
            dimension_semantics=("parallel",),
            vmem_limit_bytes=vmem_limit,
        ),
    )(q, k, v)


def dot_prod_attn_ref(q, k, v):
    d = q.shape[-1]
    scores = jnp.einsum("bld,bd->bl", k, q) / jnp.sqrt(jnp.float32(d))
    w = jax.nn.softmax(scores, axis=-1)
    return jnp.einsum("bl,bld->bd", w, v)


if __name__ == "__main__":
    B, L, d_model, d_v = 2, 8, 32, 32
    key = jax.random.PRNGKey(0)
    kq, kk, kv = jax.random.split(key, 3)

    q = jax.random.normal(kq, (B, d_model), dtype=jnp.float32)
    k = jax.random.normal(kk, (B, L, d_model), dtype=jnp.float32)
    v = jax.random.normal(kv, (B, L, d_v), dtype=jnp.float32)

    out = jax.block_until_ready(dot_prod_attn(q, k, v))
    ref = dot_prod_attn_ref(q, k, v)

    assert out.shape == (B, d_v)
    max_err = float(jnp.max(jnp.abs(out - ref)))
    assert jnp.allclose(out, ref, atol=1e-3, rtol=1e-3), max_err

    print("KERNEL_OK")
</pallas_src>

<mosaic_0001>
module attributes {stable_mosaic.version = 11 : i64} {
  func.func @dot_prod_attn_kernel(%arg0: i32, %arg1: memref<2x32xf32, #tpu.memory_space<vmem>>, %arg2: memref<2x8x32xf32, #tpu.memory_space<vmem>>, %arg3: memref<2x8x32xf32, #tpu.memory_space<vmem>>, %arg4: memref<2x32xf32, #tpu.memory_space<vmem>>) attributes {dimension_semantics = [#tpu.dimension_semantics<parallel>], iteration_bounds = array<i64: 1>, scalar_prefetch = 0 : i64, scratch_operands = 0 : i64, tpu.core_type = #tpu.core_type<tc>, window_params = [{transform_indices = @transform_0, window_bounds = array<i64: 2, 32>}, {transform_indices = @transform_1, window_bounds = array<i64: 2, 8, 32>}, {transform_indices = @transform_2, window_bounds = array<i64: 2, 8, 32>}, {transform_indices = @transform_3, window_bounds = array<i64: 2, 32>}]} {
    %c0 = arith.constant 0 : index
    %c0_0 = arith.constant 0 : index
    %0 = vector.load %arg1[%c0, %c0_0] : memref<2x32xf32, #tpu.memory_space<vmem>>, vector<2x32xf32>
    %cst = arith.constant 0.176776692 : f32
    %1 = vector.broadcast %cst : f32 to vector<2x32xf32>
    %2 = arith.mulf %0, %1 : vector<2x32xf32>
    %c0_1 = arith.constant 0 : index
    %c0_2 = arith.constant 0 : index
    %c0_3 = arith.constant 0 : index
    %3 = vector.load %arg2[%c0_1, %c0_2, %c0_3] : memref<2x8x32xf32, #tpu.memory_space<vmem>>, vector<2x8x32xf32>
    %c0_4 = arith.constant 0 : index
    %c0_5 = arith.constant 0 : index
    %c0_6 = arith.constant 0 : index
    %4 = vector.load %arg3[%c0_4, %c0_5, %c0_6] : memref<2x8x32xf32, #tpu.memory_space<vmem>>, vector<2x8x32xf32>
    %5 = vector.shape_cast %2 : vector<2x32xf32> to vector<2x1x32xf32>
    %6 = vector.broadcast %5 : vector<2x1x32xf32> to vector<2x8x32xf32>
    %7 = arith.mulf %3, %6 : vector<2x8x32xf32>
    %cst_7 = arith.constant dense<0.000000e+00> : vector<2x8xf32>
    %8 = vector.multi_reduction <add>, %7, %cst_7 [2] : vector<2x8x32xf32> to vector<2x8xf32>
    %cst_8 = arith.constant dense<0xFF800000> : vector<2xf32>
    %9 = vector.multi_reduction <maximumf>, %8, %cst_8 [1] : vector<2x8xf32> to vector<2xf32>
    %10 = vector.shape_cast %9 : vector<2xf32> to vector<2x1xf32>
    %11 = vector.broadcast %10 : vector<2x1xf32> to vector<2x8xf32>
    %12 = arith.subf %8, %11 : vector<2x8xf32>
    %13 = math.exp %12 : vector<2x8xf32>
    %cst_9 = arith.constant dense<0.000000e+00> : vector<2xf32>
    %14 = vector.multi_reduction <add>, %13, %cst_9 [1] : vector<2x8xf32> to vector<2xf32>
    %15 = vector.shape_cast %14 : vector<2xf32> to vector<2x1xf32>
    %16 = vector.broadcast %15 : vector<2x1xf32> to vector<2x8xf32>
    %17 = arith.divf %13, %16 : vector<2x8xf32>
    %18 = vector.shape_cast %17 : vector<2x8xf32> to vector<2x8x1xf32>
    %19 = vector.broadcast %18 : vector<2x8x1xf32> to vector<2x8x32xf32>
    %20 = arith.mulf %19, %4 : vector<2x8x32xf32>
    %cst_10 = arith.constant dense<0.000000e+00> : vector<2x32xf32>
    %21 = vector.multi_reduction <add>, %20, %cst_10 [1] : vector<2x8x32xf32> to vector<2x32xf32>
    %c0_11 = arith.constant 0 : index
    %c0_12 = arith.constant 0 : index
    %22 = vector.load %arg4[%c0_11, %c0_12] : memref<2x32xf32, #tpu.memory_space<vmem>>, vector<2x32xf32>
    tpu.vector_store %arg4[%c0_11, %c0_12], %21 {strides = array<i32>} : memref<2x32xf32, #tpu.memory_space<vmem>>, vector<2x32xf32>,
    return
  }
  func.func @transform_0(%arg0: i32) -> (i32, i32) {
    %c0_i32 = arith.constant 0 : i32
    %c0_i32_0 = arith.constant 0 : i32
    return %arg0, %c0_i32 : i32, i32
  }
  func.func @transform_1(%arg0: i32) -> (i32, i32, i32) {
    %c0_i32 = arith.constant 0 : i32
    %c0_i32_0 = arith.constant 0 : i32
    %c0_i32_1 = arith.constant 0 : i32
    return %arg0, %c0_i32, %c0_i32_0 : i32, i32, i32
  }
  func.func @transform_2(%arg0: i32) -> (i32, i32, i32) {
    %c0_i32 = arith.constant 0 : i32
    %c0_i32_0 = arith.constant 0 : i32
    %c0_i32_1 = arith.constant 0 : i32
    return %arg0, %c0_i32, %c0_i32_0 : i32, i32, i32
  }
  func.func @transform_3(%arg0: i32) -> (i32, i32) {
    %c0_i32 = arith.constant 0 : i32
    %c0_i32_0 = arith.constant 0 : i32
    return %arg0, %c0_i32 : i32, i32
  }
}

</mosaic_0001>

<bundles_post_ra>
// kernel: dot_prod_attn.1
= control target key start
LH: loop header
LB: loop body
LE: loop exit
PB: predicated region body
PF: predicated region fallthrough
CT: control target
= control target key end

     0   :  { %8 = vsyncpa [#allocation3], 0  ;;  %s373_s0 = inlined_call_operand.hbm [shape: f32[2,32], index: 0, kind: input, shape index: {}]   ;;  %s374_s1 = inlined_call_operand.hbm [shape: f32[2,8,32], index: 1, kind: input, shape index: {}]   ;;  %s375_s2 = inlined_call_operand.hbm [shape: f32[2,8,32], index: 2, kind: input, shape index: {}]   ;;  %s376_s3 = inlined_call_operand.hbm [shape: f32[2,32], index: 3, kind: output, shape index: {}]  }
   0x1   :  { %9 = vsyncpa [#allocation6], 0  ;;  %s26_s14 = sshll.u32 %s374_s1, 4  ;;  %s27_s14 = int_to_ptr.hbm [resolvable:$true] %s26_s14 }
   0x2   :  { %10 = vsyncpa [#allocation4], 0  ;;  %s325_s15 = smov [#allocation5]   ;;  %s16_s19 = sshll.u32 %s373_s0, 4  ;;  %s17_s19 = int_to_ptr.hbm [resolvable:$true] %s16_s19 }
   0x3   :  { %s28_s16 = sshll.u32 %s325_s15, 4  ;;  %s326_s20 = smov 128   ;;  %s29_s16 = int_to_ptr.vmem [resolvable:$true] %s28_s16 }
   0x4   :  { %s327_s21 = smov 8   ;;  %s328_s22 = smov [#allocation2]  }
   0x5   :  { %34 = dma.hbm_to_vmem [thread:$0]  %s27_s14, 256, %s29_s16, [#allocation6], %s326_s20, %s326_s20, %s327_s21  }
   0x6   :  { %s18_s23 = sshll.u32 %s328_s22, 4  ;;  %s39_s26 = sshll.u32 %s375_s2, 4  ;;  %s19_s23 = int_to_ptr.vmem [resolvable:$true] %s18_s23  ;;  %s40_s26 = int_to_ptr.hbm [resolvable:$true] %s39_s26 }
   0x7   :  { %21 = dma.hbm_to_vmem [thread:$0]  %s17_s19, 32, %s19_s23, [#allocation3]  }
   0x8   :  { %s329_s1 = smov [#allocation7]  }
   0x9   :  { %s41_s27 = sshll.u32 %s329_s1, 4  ;;  %s42_s27 = int_to_ptr.vmem [resolvable:$true] %s41_s27 }
   0xa   :  { %47 = dma.hbm_to_vmem [thread:$0]  %s40_s26, 256, %s42_s27, [#allocation6], %s326_s20, %s326_s20, %s327_s21  }
   0xb   :  { %319 = dma.done.wait [#allocation3], 32  }
   0xc   :  { %320 = vsyncadd [#allocation3], 4294967264 }
   0xd   :  { %321 = dma.done.wait [#allocation6], 512  }
   0xe   :  { %322 = vsyncadd [#allocation6], 4294966784  ;;  %v60_v0 = vld [vmem:[#allocation2] sm:$0x3]  ;;  %v62_v2 = vld [vmem:[#allocation5] sm:$0xff]  ;;  %vm74_vm0 = vcmask 261120   ;;  %v83_v12 = vlaneseq }
   0xf   :  { %v61_v1 = vmul.f32 0.17677669, %v60_v0  ;;  %v63_v7 = vld [vmem:[#allocation5 + $0x8] sm:$0xff]  ;;  %vm87_vm1 = vcmask 1041409   ;;  %vm90_vm2 = vcmask 58368   ;;  %v330_v19 = vmov 0  }
  0x10   :  { %v84_v13 = vand.u32 127, %v83_v12  ;;  %213 = vset.pattern.permute.xlu2 %v330_v19  ;;  %212 = vset.pattern.permute.xlu1 %v330_v19  ;;  %v64_v60 = vld [vmem:[#allocation7] sm:$0xff]  ;;  %v65_v61 = vld [vmem:[#allocation7 + $0x8] sm:$0xff]  ;;  %s331_s0 = smov [#allocation8]   ;;  %s194_s30 = sshll.u32 %s376_s3, 4  ;;  %vm185_vm11 = vcmask 254976   ;;  %s195_s30 = int_to_ptr.hbm [resolvable:$true] %s194_s30 }
  0x11   :  { %v68_v3 = vperm.slane %v61_v1, 0  ;;  %v67_v4 = vrot.slane %v61_v1, 1  ;;  %214 = vset.pattern.permute.xlu0 %v330_v19  ;;  %s192_s2 = sshll.u32 %s331_s0, 4  ;;  %s193_s2 = int_to_ptr.vmem [resolvable:$true] %s192_s2 }
  0x13   :  { %v72_v5 = vmul.f32 %v68_v3, %v62_v2  ;;  %v69_v6 = vperm.slane %v67_v4, 0 }
  0x15   :  { %v75_v8 = vsel %vm74_vm0, %v72_v5, 0.0  ;;  %v73_v9 = vmul.f32 %v69_v6, %v63_v7 }
  0x16   :  { %76 = vadd.xlane.f32.xlu0 %v75_v8 }
  0x17   :  { %v78_v10 = vsel %vm74_vm0, %v73_v9, 0.0 }
  0x1e   :  { %79 = vadd.xlane.f32.xlu0 %v78_v10 }
  0x89   :  { %v77_v11 = vpop.xlane.xlu0 %76 }
  0x8a   :  { %v85_v15 = vperm.slane %v77_v11, %v84_v13 }
  0x91   :  { %v80_v14 = vpop.xlane.xlu0 %79 }
  0x92   :  { %v86_v16 = vperm.slane %v80_v14, %v84_v13 }
  0x94   :  { %v88_v17 = vsel %vm87_vm1, %v86_v16, %v85_v15 }
  0x95   :  { %v91_v18 = vsel %vm90_vm2, %v88_v17, -inf }
  0x96   :  { %92 = vmax.xlane.f32.xlu1 %v91_v18 }
 0x109   :  { %v93_v20 = vpop.xlane.xlu1 %92 }
 0x10a   :  { %v95_v21 = vperm.slane %v93_v20, 0  ;;  %v96_v22 = vperm.slane %v93_v20, 1 }
 0x10c   :  { %v99_v23 = vsub.f32 %v77_v11, %v95_v21  ;;  %v100_v24 = vsub.f32 %v80_v14, %v96_v22 }
 0x10e   :  { %v101_v25 = vmul.f32 1.442695, %v99_v23  ;;  %v103_v26 = vmul.f32 1.442695, %v100_v24 }
 0x110   :  { %215 = vpow2.f32 %v101_v25 }
 0x111   :  { %217 = vpow2.f32 %v103_v26 }
 0x116   :  { %v216_v27 = vpop.eup %215 }
 0x117   :  { %v218_v28 = vpop.eup %217  ;;  %108 = vperm.xlu1 %212, %v216_v27  }
 0x118   :  { %111 = vperm.xlu2 %213, %v218_v28  }
 0x172   :  { %v112_v29 = vpop.permute.xlu2 %111 }
 0x173   :  { %v114_v31 = vperm.slane %v112_v29, %v84_v13 }
 0x189   :  { %v109_v30 = vpop.permute.xlu1 %108 }
 0x18a   :  { %v113_v32 = vperm.slane %v109_v30, %v84_v13 }
 0x18c   :  { %v115_v33 = vsel %vm87_vm1, %v114_v31, %v113_v32 }
 0x18d   :  { %v117_v34 = vsel %vm90_vm2, %v115_v33, 0.0 }
 0x18e   :  { %118 = vadd.xlane.f32.xlu2 %v117_v34 }
 0x201   :  { %v119_v35 = vpop.xlane.xlu2 %118 }
 0x202   :  { %v121_v36 = vperm.slane %v119_v35, 0  ;;  %v122_v37 = vperm.slane %v119_v35, 1 }
 0x204   :  { %219 = vrcp.f32 %v121_v36  ;;  %v136_v44 = vand.u32 2147483648, %v121_v36  ;;  %v151_v45 = vand.u32 2147483648, %v122_v37  ;;  %v134_v47 = vand.u32 2147483647, %v121_v36 }
 0x205   :  { %221 = vrcp.f32 %v122_v37  ;;  %v149_v49 = vand.u32 2147483647, %v122_v37  ;;  %vm130_vm5 = vweird.f32 %v121_v36  ;;  %vm145_vm6 = vweird.f32 %v122_v37 }
 0x206   :  { %v137_v52 = vor.u32 1.1754944e-38, %v136_v44  ;;  %v152_v53 = vor.u32 1.1754944e-38, %v151_v45  ;;  %vm135_vm9 = vcmp.eq.f32.partialorder %v134_v47, 8.507059e+37 }
 0x207   :  { %vm150_vm10 = vcmp.eq.f32.partialorder %v149_v49, 8.507059e+37 }
 0x20a   :  { %v220_v38 = vpop.eup %219 }
 0x20b   :  { %v222_v39 = vpop.eup %221  ;;  %v126_v40 = vmul.f32 %v220_v38, %v121_v36  ;;  %vm131_vm3 = vweird.f32 %v220_v38 }
 0x20c   :  { %v141_v41 = vmul.f32 %v222_v39, %v122_v37  ;;  %vm146_vm4 = vweird.f32 %v222_v39  ;;  %vm132_vm7 = vmor %vm130_vm5, %vm131_vm3 }
 0x20d   :  { %v127_v42 = vsub.f32 1.0, %v126_v40  ;;  %vm147_vm8 = vmor %vm145_vm6, %vm146_vm4 }
 0x20e   :  { %v142_v43 = vsub.f32 1.0, %v141_v41 }
 0x20f   :  { %v128_v46 = vmul.f32 %v220_v38, %v127_v42 }
 0x210   :  { %v143_v48 = vmul.f32 %v222_v39, %v142_v43 }
 0x211   :  { %v129_v50 = vadd.f32 %v220_v38, %v128_v46 }
 0x212   :  { %v144_v51 = vadd.f32 %v222_v39, %v143_v48 }
 0x213   :  { %v133_v54 = vsel %vm132_vm7, %v220_v38, %v129_v50 }
 0x214   :  { %v148_v55 = vsel %vm147_vm8, %v222_v39, %v144_v51  ;;  %v138_v56 = vsel %vm135_vm9, %v137_v52, %v133_v54 }
 0x215   :  { %v153_v57 = vsel %vm150_vm10, %v152_v53, %v148_v55  ;;  %v139_v58 = vmul.f32 %v216_v27, %v138_v56 }
 0x216   :  { %v154_v59 = vmul.f32 %v218_v28, %v153_v57 }
 0x217   :  { %157 = vperm.xlu0 %214, %v139_v58  }
 0x218   :  { %162 = vperm.xlu1 %212, %v154_v59  }
 0x289   :  { %v158_v62 = vpop.permute.xlu0 %157 }
 0x28a   :  { %v163_v63 = vpop.permute.xlu1 %162  ;;  %v165_v0 = vmul.f32 %v158_v62, %v64_v60 }
 0x28b   :  { %v166_v1 = vmul.f32 %v163_v63, %v65_v61 }
 0x28c   :  { %v167_v2 = vsel %vm74_vm0, %v165_v0, 0.0 }
 0x28d   :  { %v174_v3 = vsel %vm74_vm0, %v166_v1, 0.0  ;;  %v168_v4 = vrot.slane %v167_v2, 4 }
 0x28e   :  { %v175_v5 = vrot.slane %v174_v3, 4 }
 0x28f   :  { %v169_v6 = vadd.f32 %v168_v4, %v167_v2 }
 0x290   :  { %v176_v7 = vadd.f32 %v175_v5, %v174_v3 }
 0x291   :  { %v170_v8 = vrot.slane %v169_v6, 2 }
 0x292   :  { %v177_v9 = vrot.slane %v176_v7, 2 }
 0x293   :  { %v171_v10 = vadd.f32 %v170_v8, %v169_v6 }
 0x294   :  { %v178_v11 = vadd.f32 %v177_v9, %v176_v7 }
 0x295   :  { %v172_v12 = vrot.slane %v171_v10, 1 }
 0x296   :  { %v179_v13 = vrot.slane %v178_v11, 1 }
 0x297   :  { %v173_v14 = vadd.f32 %v172_v12, %v171_v10 }
 0x298   :  { %v180_v15 = vadd.f32 %v179_v13, %v178_v11 }
 0x29a   :  { %v183_v16 = vsel %vm87_vm1, %v180_v15, %v173_v14 }
 0x29b   :  { %186 = vst.msk [vmem:[#allocation8] sm:$0x3] %vm185_vm11, %v183_v16 }
 0x29c   :  { %197 = dma.vmem_to_hbm [thread:$0]  %s193_s2, 32, %s195_s30, [#allocation4]  }
 0x29d   :  { %323 = dma.done.wait [#allocation4], 32  }
 0x29e   :  { %324 = vsyncadd [#allocation4], 4294967264 }
 0x29f   :  { %202 = vsyncpa [#allocation3], 1 }
 0x2a0   :  { %203 = vsyncpa [#allocation6], 1 }
 0x2a1   :  { %204 = vsyncpa [#allocation4], 1 }

</bundles_post_ra>
